<compile_context>
chip_gen: v7x
topology: tpu7x:2x2x1
jax: 0.10.0
libtpu: 0.0.40
codegen_flags: <defaults>
</compile_context>

<pallas_src>
import functools

import jax
import jax.numpy as jnp
from jax.experimental import pallas as pl
from jax.experimental.pallas import tpu as pltpu


def _round_up(x, m):
    return ((x + m - 1) // m) * m


def _store_col_as_row(col, o_ref):
    """Store a (rows, 1) f32 column into the (1, rows) lane-dense output ref.

    Relayout is done in <=128-row chunks: broadcast the column across lanes,
    mask with an iota-identity, and reduce over sublanes.  Uses only
    broadcast / select / cross-sublane-reduce, which lower robustly in Mosaic
    (avoids jnp.transpose / reshape relayouts of degenerate-minor arrays).
    """
    rows = col.shape[0]
    chunk = min(128, rows)
    assert rows % chunk == 0, (rows, chunk)   # guaranteed by wrapper tiling
    ii = jax.lax.broadcasted_iota(jnp.int32, (chunk, chunk), 0)
    jj = jax.lax.broadcasted_iota(jnp.int32, (chunk, chunk), 1)
    eye = ii == jj                             # built once, reused per chunk
    for c in range(rows // chunk):
        piece = col[c * chunk:(c + 1) * chunk, :]                  # (chunk, 1)
        row = jnp.sum(jnp.where(eye, piece, 0.0), axis=0,
                      keepdims=True)                               # (1, chunk)
        o_ref[:, c * chunk:(c + 1) * chunk] = row.astype(o_ref.dtype)


def qfunc_kernel(obs_ref, act_ref, w1o_ref, w1a_ref, b1_ref, w2_ref, b2_ref,
                 w3_ref, b3_ref, o_ref):
    # Layer 1: fused concat -> two MXU matmuls, f32 accumulate, f32 bias+ReLU.
    h = jnp.dot(obs_ref[...], w1o_ref[...], preferred_element_type=jnp.float32)
    h = h + jnp.dot(act_ref[...], w1a_ref[...],
                    preferred_element_type=jnp.float32)
    h = jnp.maximum(h + b1_ref[...], 0.0)

    # Layer 2: MXU matmul (inputs cast to weight dtype), f32 bias+ReLU.
    h = jnp.dot(h.astype(w2_ref.dtype), w2_ref[...],
                preferred_element_type=jnp.float32)
    h = jnp.maximum(h + b2_ref[...], 0.0)

    # Output layer (out_features == 1): VPU multiply + lane reduction instead
    # of an N=1 MXU pass; w3 is pre-reshaped to a [1, H2] broadcast row.
    q_col = jnp.sum(h * w3_ref[...].astype(jnp.float32), axis=-1,
                    keepdims=True) + b3_ref[...]                   # (tile, 1)

    # Lane-dense writeback: (tile, 1) column -> (1, tile) row.
    _store_col_as_row(q_col, o_ref)


@functools.partial(jax.jit, static_argnames=("tile_b", "compute_dtype",
                                             "vmem_limit_bytes"))
def mlp_q_function(obs, act, params, *, tile_b=1024, compute_dtype=None,
                   vmem_limit_bytes=None):
    """Pallas forward: returns q with shape [batch] (squeezed last dim)."""
    batch, obs_dim = obs.shape
    act_dim = act.shape[-1]
    w1, b1, w2, b2, w3, b3 = params
    h1 = w1.shape[1]
    h2 = w2.shape[1]

    # Fuse the concat: split W1 along its input rows once, in the wrapper.
    w1_obs, w1_act = w1[:obs_dim], w1[obs_dim:]
    # Present the [H2, 1] output weight as a [1, H2] broadcast row.
    w3_row = jnp.reshape(w3, (1, h2))

    if compute_dtype is not None:
        obs = obs.astype(compute_dtype)
        act = act.astype(compute_dtype)
        w1_obs = w1_obs.astype(compute_dtype)
        w1_act = w1_act.astype(compute_dtype)
        w2 = w2.astype(compute_dtype)
        w3_row = w3_row.astype(compute_dtype)
    # Biases stay f32: the bias+ReLU epilogue is always f32 on the VPU.

    # Tile selection: tiny batches -> one <=128-row tile (single grid step);
    # otherwise a multiple-of-128 tile so the lane-dense output blocking and
    # the in-kernel relayout chunks are exact.
    b8 = _round_up(batch, 8)
    if b8 <= 128 and b8 <= int(tile_b):
        tile = b8
    else:
        tile = _round_up(min(int(tile_b), b8), 128)
    padded = _round_up(batch, tile)
    if padded != batch:
        pad = padded - batch
        obs = jnp.pad(obs, ((0, pad), (0, 0)))
        act = jnp.pad(act, ((0, pad), (0, 0)))
    grid = (padded // tile,)

    tiled = lambda shape: pl.BlockSpec(shape, lambda i: (i, 0))
    resident = lambda shape: pl.BlockSpec(shape, lambda i: (0, 0))

    q = pl.pallas_call(
        qfunc_kernel,
        out_shape=jax.ShapeDtypeStruct((1, padded), jnp.float32),
        grid=grid,
        in_specs=[
            tiled((tile, obs_dim)),        # obs tile
            tiled((tile, act_dim)),        # act tile
            resident((obs_dim, h1)),       # W1[:obs_dim]
            resident((act_dim, h1)),       # W1[obs_dim:]
            resident((1, h1)),             # b1
            resident((h1, h2)),            # W2
            resident((1, h2)),             # b2
            resident((1, h2)),             # W3 (as row)
            resident((1, 1)),              # b3
        ],
        out_specs=pl.BlockSpec((1, tile), lambda i: (0, i)),   # lane-dense row
        compiler_params=pltpu.CompilerParams(
            dimension_semantics=("parallel",),
            vmem_limit_bytes=vmem_limit_bytes,
        ),
    )(obs, act, w1_obs, w1_act, b1, w2, b2, w3_row, b3)

    # Glue: drop batch padding + torch.squeeze(q, -1).
    return q[0, :batch]


def init_params(key, obs_dim, act_dim, hidden_sizes):
    """Deterministic synthetic parameters matching the module's shapes."""
    sizes = [obs_dim + act_dim] + list(hidden_sizes) + [1]
    params = []
    for j in range(len(sizes) - 1):
        key, kw, kb = jax.random.split(key, 3)
        fan_in = sizes[j]
        bound = 1.0 / jnp.sqrt(fan_in)
        w = jax.random.uniform(kw, (sizes[j], sizes[j + 1]),
                               minval=-bound, maxval=bound, dtype=jnp.float32)
        b = jax.random.uniform(kb, (1, sizes[j + 1]),
                               minval=-bound, maxval=bound, dtype=jnp.float32)
        params += [w, b]
    return tuple(params)


def reference_forward(obs, act, params):
    """Pure-JAX reference for a sanity check."""
    x = jnp.concatenate([obs, act], axis=-1)
    w1, b1, w2, b2, w3, b3 = params
    h = jnp.maximum(x @ w1 + b1, 0.0)
    h = jnp.maximum(h @ w2 + b2, 0.0)
    return jnp.squeeze(h @ w3 + b3, axis=-1)


if __name__ == "__main__":
    obs_dim, act_dim = 16, 4
    hidden_sizes = (32, 32)
    batch = 8

    key = jax.random.PRNGKey(0)
    k_obs, k_act, k_params = jax.random.split(key, 3)
    obs = jax.random.normal(k_obs, (batch, obs_dim), dtype=jnp.float32)
    act = jax.random.normal(k_act, (batch, act_dim), dtype=jnp.float32)
    params = init_params(k_params, obs_dim, act_dim, hidden_sizes)

    # f32 path, tiny batch (single-tile fast path).
    q = mlp_q_function(obs, act, params)
    jax.block_until_ready(q)
    q_ref = reference_forward(obs, act, params)
    assert q.shape == (batch,), q.shape
    assert jnp.allclose(q, q_ref, atol=1e-5, rtol=1e-5), (q, q_ref)

    # Larger batch exercising the batch grid (multiple tiles + padding) and
    # the chunked lane-dense output relayout.
    big = 300
    k_obs2, k_act2 = jax.random.split(jax.random.PRNGKey(1))
    obs_b = jax.random.normal(k_obs2, (big, obs_dim), dtype=jnp.float32)
    act_b = jax.random.normal(k_act2, (big, act_dim), dtype=jnp.float32)
    q_b = mlp_q_function(obs_b, act_b, params, tile_b=128)
    jax.block_until_ready(q_b)
    q_b_ref = reference_forward(obs_b, act_b, params)
    assert q_b.shape == (big,), q_b.shape
    assert jnp.allclose(q_b, q_b_ref, atol=1e-5, rtol=1e-5)

    # bf16 compute path (f32 accumulation / epilogue) — loose tolerance.
    q_bf16 = mlp_q_function(obs_b, act_b, params, tile_b=128,
                            compute_dtype=jnp.bfloat16)
    jax.block_until_ready(q_bf16)
    assert jnp.allclose(q_bf16, q_b_ref, atol=5e-2, rtol=5e-2)

    print("KERNEL_OK")
</pallas_src>

<mosaic_0001>
module attributes {stable_mosaic.version = 11 : i64} {
  func.func @qfunc_kernel(%arg0: i32, %arg1: memref<8x16xf32, #tpu.memory_space<vmem>>, %arg2: memref<8x4xf32, #tpu.memory_space<vmem>>, %arg3: memref<16x32xf32, #tpu.memory_space<vmem>>, %arg4: memref<4x32xf32, #tpu.memory_space<vmem>>, %arg5: memref<1x32xf32, #tpu.memory_space<vmem>>, %arg6: memref<32x32xf32, #tpu.memory_space<vmem>>, %arg7: memref<1x32xf32, #tpu.memory_space<vmem>>, %arg8: memref<1x32xf32, #tpu.memory_space<vmem>>, %arg9: memref<1x1xf32, #tpu.memory_space<vmem>>, %arg10: memref<1x8xf32, #tpu.memory_space<vmem>>) attributes {dimension_semantics = [#tpu.dimension_semantics<parallel>], iteration_bounds = array<i64: 1>, scalar_prefetch = 0 : i64, scratch_operands = 0 : i64, tpu.core_type = #tpu.core_type<tc>, window_params = [{transform_indices = @transform_0, window_bounds = array<i64: 8, 16>}, {transform_indices = @transform_1, window_bounds = array<i64: 8, 4>}, {pipeline_mode = #tpu.pipeline_mode<synchronous>, transform_indices = @transform_2, window_bounds = array<i64: 16, 32>}, {pipeline_mode = #tpu.pipeline_mode<synchronous>, transform_indices = @transform_3, window_bounds = array<i64: 4, 32>}, {pipeline_mode = #tpu.pipeline_mode<synchronous>, transform_indices = @transform_4, window_bounds = array<i64: 1, 32>}, {pipeline_mode = #tpu.pipeline_mode<synchronous>, transform_indices = @transform_5, window_bounds = array<i64: 32, 32>}, {pipeline_mode = #tpu.pipeline_mode<synchronous>, transform_indices = @transform_6, window_bounds = array<i64: 1, 32>}, {pipeline_mode = #tpu.pipeline_mode<synchronous>, transform_indices = @transform_7, window_bounds = array<i64: 1, 32>}, {pipeline_mode = #tpu.pipeline_mode<synchronous>, transform_indices = @transform_8, window_bounds = array<i64: 1, 1>}, {transform_indices = @transform_9, window_bounds = array<i64: 1, 8>}]} {
    %c0 = arith.constant 0 : index
    %c0_0 = arith.constant 0 : index
    %0 = vector.load %arg1[%c0, %c0_0] : memref<8x16xf32, #tpu.memory_space<vmem>>, vector<8x16xf32>
    %c0_1 = arith.constant 0 : index
    %c0_2 = arith.constant 0 : index
    %1 = vector.load %arg3[%c0_1, %c0_2] : memref<16x32xf32, #tpu.memory_space<vmem>>, vector<16x32xf32>
    %cst = arith.constant dense<0.000000e+00> : vector<8x32xf32>
    %2 = tpu.matmul %0, %1, %cst {dimension_numbers = #tpu.dot_dimension_numbers<[1], [0], [0], [1], [0, 0, 1, 1], [], []>} : vector<8x16xf32>, vector<16x32xf32>, vector<8x32xf32> -> vector<8x32xf32>
    %c0_3 = arith.constant 0 : index
    %c0_4 = arith.constant 0 : index
    %3 = vector.load %arg2[%c0_3, %c0_4] : memref<8x4xf32, #tpu.memory_space<vmem>>, vector<8x4xf32>
    %c0_5 = arith.constant 0 : index
    %c0_6 = arith.constant 0 : index
    %4 = vector.load %arg4[%c0_5, %c0_6] : memref<4x32xf32, #tpu.memory_space<vmem>>, vector<4x32xf32>
    %cst_7 = arith.constant dense<0.000000e+00> : vector<8x32xf32>
    %5 = tpu.matmul %3, %4, %cst_7 {dimension_numbers = #tpu.dot_dimension_numbers<[1], [0], [0], [1], [0, 0, 1, 1], [], []>} : vector<8x4xf32>, vector<4x32xf32>, vector<8x32xf32> -> vector<8x32xf32>
    %6 = arith.addf %2, %5 : vector<8x32xf32>
    %c0_8 = arith.constant 0 : index
    %c0_9 = arith.constant 0 : index
    %7 = vector.load %arg5[%c0_8, %c0_9] : memref<1x32xf32, #tpu.memory_space<vmem>>, vector<1x32xf32>
    %8 = vector.broadcast %7 : vector<1x32xf32> to vector<8x32xf32>
    %9 = arith.addf %6, %8 : vector<8x32xf32>
    %cst_10 = arith.constant 0.000000e+00 : f32
    %10 = vector.broadcast %cst_10 : f32 to vector<8x32xf32>
    %11 = arith.maximumf %9, %10 : vector<8x32xf32>
    %c0_11 = arith.constant 0 : index
    %c0_12 = arith.constant 0 : index
    %12 = vector.load %arg6[%c0_11, %c0_12] : memref<32x32xf32, #tpu.memory_space<vmem>>, vector<32x32xf32>
    %cst_13 = arith.constant dense<0.000000e+00> : vector<8x32xf32>
    %13 = tpu.matmul %11, %12, %cst_13 {dimension_numbers = #tpu.dot_dimension_numbers<[1], [0], [0], [1], [0, 0, 1, 1], [], []>} : vector<8x32xf32>, vector<32x32xf32>, vector<8x32xf32> -> vector<8x32xf32>
    %c0_14 = arith.constant 0 : index
    %c0_15 = arith.constant 0 : index
    %14 = vector.load %arg7[%c0_14, %c0_15] : memref<1x32xf32, #tpu.memory_space<vmem>>, vector<1x32xf32>
    %15 = vector.broadcast %14 : vector<1x32xf32> to vector<8x32xf32>
    %16 = arith.addf %13, %15 : vector<8x32xf32>
    %cst_16 = arith.constant 0.000000e+00 : f32
    %17 = vector.broadcast %cst_16 : f32 to vector<8x32xf32>
    %18 = arith.maximumf %16, %17 : vector<8x32xf32>
    %c0_17 = arith.constant 0 : index
    %c0_18 = arith.constant 0 : index
    %19 = vector.load %arg8[%c0_17, %c0_18] : memref<1x32xf32, #tpu.memory_space<vmem>>, vector<1x32xf32>
    %20 = vector.broadcast %19 : vector<1x32xf32> to vector<8x32xf32>
    %21 = arith.mulf %18, %20 : vector<8x32xf32>
    %cst_19 = arith.constant dense<0.000000e+00> : vector<8xf32>
    %22 = vector.multi_reduction <add>, %21, %cst_19 [1] : vector<8x32xf32> to vector<8xf32>
    %23 = vector.shape_cast %22 : vector<8xf32> to vector<8x1xf32>
    %c0_20 = arith.constant 0 : index
    %c0_21 = arith.constant 0 : index
    %24 = vector.load %arg9[%c0_20, %c0_21] : memref<1x1xf32, #tpu.memory_space<vmem>>, vector<1x1xf32>
    %25 = vector.broadcast %24 : vector<1x1xf32> to vector<8x1xf32>
    %26 = arith.addf %23, %25 : vector<8x1xf32>
    %27 = tpu.iota {dimensions = array<i32: 0>} : vector<8x8xi32>
    %28 = tpu.iota {dimensions = array<i32: 1>} : vector<8x8xi32>
    %29 = arith.cmpi eq, %27, %28 : vector<8x8xi32>
    %cst_22 = arith.constant 0.000000e+00 : f32
    %30 = vector.shape_cast %26 : vector<8x1xf32> to vector<8x1xf32>
    %31 = vector.broadcast %30 : vector<8x1xf32> to vector<8x8xf32>
    %32 = vector.broadcast %cst_22 : f32 to vector<8x8xf32>
    %33 = arith.select %29, %31, %32 : vector<8x8xi1>, vector<8x8xf32>
    %cst_23 = arith.constant dense<0.000000e+00> : vector<8xf32>
    %34 = vector.multi_reduction <add>, %33, %cst_23 [0] : vector<8x8xf32> to vector<8xf32>
    %35 = vector.shape_cast %34 : vector<8xf32> to vector<1x8xf32>
    %c0_24 = arith.constant 0 : index
    %c0_25 = arith.constant 0 : index
    %36 = vector.load %arg10[%c0_24, %c0_25] : memref<1x8xf32, #tpu.memory_space<vmem>>, vector<1x8xf32>
    tpu.vector_store %arg10[%c0_24, %c0_25], %35 {strides = array<i32>} : memref<1x8xf32, #tpu.memory_space<vmem>>, vector<1x8xf32>,
    return
  }
  func.func @transform_0(%arg0: i32) -> (i32, i32) {
    %c0_i32 = arith.constant 0 : i32
    %c0_i32_0 = arith.constant 0 : i32
    return %arg0, %c0_i32 : i32, i32
  }
  func.func @transform_1(%arg0: i32) -> (i32, i32) {
    %c0_i32 = arith.constant 0 : i32
    %c0_i32_0 = arith.constant 0 : i32
    return %arg0, %c0_i32 : i32, i32
  }
  func.func @transform_2(%arg0: i32) -> (i32, i32) {
    %c0_i32 = arith.constant 0 : i32
    %c0_i32_0 = arith.constant 0 : i32
    %c0_i32_1 = arith.constant 0 : i32
    return %c0_i32, %c0_i32_0 : i32, i32
  }
  func.func @transform_3(%arg0: i32) -> (i32, i32) {
    %c0_i32 = arith.constant 0 : i32
    %c0_i32_0 = arith.constant 0 : i32
    %c0_i32_1 = arith.constant 0 : i32
    return %c0_i32, %c0_i32_0 : i32, i32
  }
  func.func @transform_4(%arg0: i32) -> (i32, i32) {
    %c0_i32 = arith.constant 0 : i32
    %c0_i32_0 = arith.constant 0 : i32
    %c0_i32_1 = arith.constant 0 : i32
    return %c0_i32, %c0_i32_0 : i32, i32
  }
  func.func @transform_5(%arg0: i32) -> (i32, i32) {
    %c0_i32 = arith.constant 0 : i32
    %c0_i32_0 = arith.constant 0 : i32
    %c0_i32_1 = arith.constant 0 : i32
    return %c0_i32, %c0_i32_0 : i32, i32
  }
  func.func @transform_6(%arg0: i32) -> (i32, i32) {
    %c0_i32 = arith.constant 0 : i32
    %c0_i32_0 = arith.constant 0 : i32
    %c0_i32_1 = arith.constant 0 : i32
    return %c0_i32, %c0_i32_0 : i32, i32
  }
  func.func @transform_7(%arg0: i32) -> (i32, i32) {
    %c0_i32 = arith.constant 0 : i32
    %c0_i32_0 = arith.constant 0 : i32
    %c0_i32_1 = arith.constant 0 : i32
    return %c0_i32, %c0_i32_0 : i32, i32
  }
  func.func @transform_8(%arg0: i32) -> (i32, i32) {
    %c0_i32 = arith.constant 0 : i32
    %c0_i32_0 = arith.constant 0 : i32
    %c0_i32_1 = arith.constant 0 : i32
    return %c0_i32, %c0_i32_0 : i32, i32
  }
  func.func @transform_9(%arg0: i32) -> (i32, i32) {
    %c0_i32 = arith.constant 0 : i32
    %c0_i32_0 = arith.constant 0 : i32
    return %c0_i32, %arg0 : i32, i32
  }
}

</mosaic_0001>

<bundles_post_ra>
// kernel: mlp_q_function.1
= control target key start
LH: loop header
LB: loop body
LE: loop exit
PB: predicated region body
PF: predicated region fallthrough
CT: control target
= control target key end

     0   :  { %s530_s0 = inlined_call_operand.vmem [shape: f32[8,16], index: 0, kind: input, shape index: {}]   ;;  %s531_s1 = inlined_call_operand.vmem [shape: f32[8,4], index: 1, kind: input, shape index: {}]   ;;  %s532_s2 = inlined_call_operand.vmem [shape: f32[16,32], index: 2, kind: input, shape index: {}]   ;;  %s533_s3 = inlined_call_operand.vmem [shape: f32[4,32], index: 3, kind: input, shape index: {}]   ;;  %s534_s4 = inlined_call_operand.vmem [shape: f32[1,32], index: 4, kind: input, shape index: {}]   ;;  %s535_s5 = inlined_call_operand.vmem [shape: f32[32,32], index: 5, kind: input, shape index: {}]   ;;  %s536_s6 = inlined_call_operand.vmem [shape: f32[1,32], index: 6, kind: input, shape index: {}]   ;;  %s537_s7 = inlined_call_operand.vmem [shape: f32[1,32], index: 7, kind: input, shape index: {}]   ;;  %s538_s8 = inlined_call_operand.<no memory space> [shape: f32[1,1], index: 8, kind: input, shape index: {}]   ;;  %s539_s9 = inlined_call_operand.hbm [shape: f32[1,8], index: 9, kind: output, shape index: {}]  }
   0x1   :  { %v14_v0 = vstv %s538_s8 }
   0x2   :  { %15 = vst [vmem:[#allocation2] sm:$0x1] %v14_v0 }
   0x3   :  { %v39_v1 = vld [vmem:[%s533_s3] sm:$0xf]  ;;  %vm44_vm0 = vcmask 1043456   ;;  %v421_v3 = vmov 0.0   ;;  %vm422_vm1 = vmmov 0   ;;  %vm40_vm2 = vcmask 31744  }
   0x4   :  { %v38_v2 = vld [vmem:[%s531_s1] sm:$0xff]  ;;  %359 = vmatprep.subr.mxu1 %v421_v3  ;;  %361 = vmatprep.mubr.msk.f32.mxu1 %vm422_vm1, %v421_v3  ;;  %v37_v5 = vld [vmem:[%s532_s2 + $0x8] sm:$0xff]  ;;  %v423_v7 = vmov 0.0|0.0  }
   0x5   :  { %v36_v4 = vld [vmem:[%s532_s2] sm:$0xff]  ;;  %360 = vmatpush3.msk.msra.mxu1 %vm44_vm0, %v39_v1  ;;  %385 = vmatprep.subr.bf16.mxu0 %v423_v7 }
   0x6   :  { %v383_v6 = vpack.c.bf16 %v37_v5, %v36_v4 }
   0x7   :  { %16 = vsyncpa [#allocation4], 0  ;;  %362 = vmatmul.mubr.msk.f32.vlgmr.msra.gmra.mrb[0].mxu1 %vm40_vm2, %v38_v2  ;;  %382 = vmatprep.subr.bf16.mxu1 %v423_v7  ;;  %v35_v8 = vld [vmem:[%s530_s0] sm:$0xff]  ;;  %vm118_vm3 = vcmask 130048   ;;  %v202_v10 = vld [vmem:[%s535_s5 + $0x8] sm:$0xff]  ;;  %vm212_vm4 = vcmask 261120   ;;  %v306_v35 = vlaneseq }
   0x8   :  { %384 = vmatpush3.bf16.msra.mxu1 %v383_v6  ;;  %368 = vmatprep.mubr.msk.f32.mxu1 %vm422_vm1, %v421_v3  ;;  %v201_v9 = vld [vmem:[%s535_s5] sm:$0xff]  ;;  %v203_v12 = vld [vmem:[%s535_s5 + $0x10] sm:$0xff]  ;;  %v204_v13 = vld [vmem:[%s535_s5 + $0x18] sm:$0xff]  ;;  %v424_v31 = vmov 0   ;;  %vm317_vm6 = vcmask 64512   ;;  %vm325_vm7 = vcmask 57344  }
   0x9   :  { %379 = vmatprep.mubr.msk.f32.mxu0 %vm422_vm1, %v421_v3  ;;  %v386_v11 = vpack.c.bf16 %v202_v10, %v201_v9  ;;  %v389_v14 = vpack.c.bf16 %v204_v13, %v203_v12  ;;  %v344_v18 = vld [vmem:[%s534_s4] ss:$0 sm:$0xff]  ;;  %396 = vset.pattern.permute.xlu0 %v424_v31  ;;  %v307_v36 = vshrl.u32 %v306_v35, 7  ;;  %v309_v37 = vand.u32 127, %v306_v35  ;;  %s425_s4 = smov [#allocation3]  }
   0xa   :  { %v345_v23 = vld [vmem:[%s536_s6] ss:$0 sm:$0xff]  ;;  %s333_s6 = sshll.u32 %s425_s4, 4  ;;  %s334_s6 = int_to_ptr.vmem [resolvable:$true] %s333_s6 }
   0xb   :  { %369 = vmatmul.mubr.msk.f32.vlgmr.msra.gmra.mrb[2].mxu1 %vm118_vm3, %v35_v8  ;;  %387 = vmatpush3.bf16.msra.mxu0 %v386_v11  ;;  %v347_v27 = vld [vmem:[%s537_s7] ss:$0 sm:$0xff]  ;;  %vm310_vm5 = vcmp.eq.s32.totalorder %v307_v36, %v309_v37  ;;  %s397_s7 = scalar_lea.vmem %s334_s6, 16  ;;  %s401_s29 = scalar_lea.vmem %s334_s6, 32 }
   0xc   :  { %388 = vmatprep.subr.bf16.mxu0 %v423_v7  ;;  %v348_v32 = vld [vmem:[#allocation2] ss:$0 sm:$0xff]  ;;  %p398_p0 = scmp.ne.s32.totalorder %s334_s6, %s397_s7  ;;  %p402_p1 = scmp.lt.s32.totalorder %s334_s6, %s334_s6 }
   0xd   :  { %p403_p2 = scmp.lt.s32.totalorder %s401_s29, %s397_s7 }
   0xf   :  { %390 = vmatpush3.bf16.msra.mxu0 %v389_v14  ;;  %p404_p3 = por %p403_p2, %p402_p1 }
  0x11   :  { %p405_p4 = pnand %p404_p3, %p398_p0 }
  0xda   :  { %v114_v15 = vpop.f32.mrb[0].mxu1 }
  0xdb   :  { %v363_v16 = vpop.f32.mrb[1].mxu1 }
  0xde   :  { %v188_v17 = vpop.f32.mrb[2].mxu1 }
  0xdf   :  { %v189_v19 = vadd.f32 %v188_v17, %v114_v15  ;;  %v370_v20 = vpop.f32.mrb[3].mxu1 }
  0xe1   :  { %v199_v21 = vadd.f32 %v344_v18, %v189_v19 }
  0xe3   :  { %v200_v22 = vmax.f32 %v199_v21, 0.0 }
  0xe5   :  { %380 = vmatmul.mubr.msk.f32.vlgmr.msra.gmra.mrb[0].mxu0 %vm212_vm4, %v200_v22 }
 0x1b8   :  { %v282_v24 = vpop.f32.mrb[0].mxu0 }
 0x1b9   :  { %v283_v25 = vadd.f32 %v345_v23, %v282_v24  ;;  %v381_v26 = vpop.f32.mrb[1].mxu0 }
 0x1bb   :  { %v286_v28 = vmax.f32 %v283_v25, 0.0 }
 0x1bd   :  { %v294_v29 = vmul.f32 %v347_v27, %v286_v28 }
 0x1bf   :  { %v295_v30 = vsel %vm212_vm4, %v294_v29, 0.0 }
 0x1c0   :  { %296 = vadd.xlane.f32.xlu0 %v295_v30 }
 0x24d   :  { %v297_v33 = vpop.xlane.xlu0 %296 }
 0x24e   :  { %v305_v34 = vadd.f32 %v348_v32, %v297_v33 }
 0x250   :  { %313 = vperm.xlu0 %396, %v305_v34  }
 0x2cf   :  { %v314_v38 = vpop.permute.xlu0 %313 }
 0x2d0   :  { %v316_v39 = vsel %vm310_vm5, %v314_v38, 0.0 }
 0x2d1   :  { %v318_v40 = vsel %vm317_vm6, %v316_v39, 0.0 }
 0x2d2   :  { %v319_v41 = vrot.slane %v318_v40, 4 }
 0x2d4   :  { %v320_v42 = vadd.f32 %v319_v41, %v318_v40 }
 0x2d6   :  { %v321_v43 = vrot.slane %v320_v42, 2 }
 0x2d8   :  { %v322_v44 = vadd.f32 %v321_v43, %v320_v42 }
 0x2da   :  { %v323_v45 = vrot.slane %v322_v44, 1 }
 0x2dc   :  { %v324_v46 = vadd.f32 %v323_v45, %v322_v44 }
 0x2de   :  { %326 = vst.msk [vmem:[#allocation3] sm:$0x1] %vm325_vm7, %v324_v46 }
 0x2df   :  { %408 = shalt.err (!%p405_p4)
}
 0x2e0   :  { %s409_s11 = scalar_lea.hbm %s539_s9, 16 }
 0x2e1   :  { %p410_p5 = scmp.ne.s32.totalorder %s539_s9, %s409_s11  ;;  %p413_p6 = scmp.lt.u32.totalorder %s409_s11, %s539_s9 }
 0x2e3   :  { %p415_p7 = pnand %p413_p6, %p410_p5 }
 0x2e5   :  { %418 = shalt.err (!%p415_p7)
}
 0x2e6   :  { %336 = dma.vmem_to_hbm [thread:$0]  %s334_s6, 16, %s539_s9, [#allocation4]  }
 0x2e7   :  { %419 = dma.done.wait [#allocation4], 16  }
 0x2e8   :  { %420 = vsyncadd [#allocation4], 4294967280 }
 0x2e9   :  { %340 = vsyncpa [#allocation4], 1 }

</bundles_post_ra>
